<compile_context>
chip_gen: v7x
topology: tpu7x:2x2x1
jax: 0.10.0
libtpu: 0.0.40
codegen_flags: <defaults>
</compile_context>

<pallas_src>
import functools
import math

import jax
import jax.numpy as jnp
from jax.experimental import pallas as pl
from jax.experimental.pallas import tpu as pltpu


def _phuber_kernel(x_ref, t_ref, loss_ref, *, tau):
    # x_ref: (TILE_N, C) logits block, t_ref: (TILE_N, 1) int32 labels block,
    # loss_ref: (TILE_N, 1) f32 per-row loss block (distinct per grid step).
    x = x_ref[...].astype(jnp.float32)                 # (TILE_N, C)
    t = t_ref[...]                                     # (TILE_N, 1) int32

    # Numerically stable softmax pieces; class dim C is the lane axis.
    m = jnp.max(x, axis=1, keepdims=True)              # (TILE_N, 1)  XLU
    e = jnp.exp(x - m)                                  # (TILE_N, C)  EUP

    # Gather e[i, target[i]] in the same pass as the denominator (no dynamic
    # gather on TPU): one-hot mask on the lane iota + row-sum.
    col = jax.lax.broadcasted_iota(jnp.int32, e.shape, dimension=1)
    denom = jnp.sum(e, axis=1, keepdims=True)           # (TILE_N, 1)  XLU
    e_t = jnp.sum(jnp.where(col == t, e, 0.0), axis=1, keepdims=True)

    p_t = e_t / denom                                    # (TILE_N, 1)
    # log p_t only feeds the un-clipped branch, where p_t > 1/tau, so e_t is
    # far from underflow there; a -inf from log(0) is discarded by the select
    # (jnp.where does not propagate the unselected lane).
    log_p_t = jnp.log(e_t) - jnp.log(denom)

    prob_thresh = 1.0 / tau
    boundary = math.log(tau) + 1.0
    loss = jnp.where(p_t <= prob_thresh, -tau * p_t + boundary, -log_p_t)

    # Ragged last block: Pallas clips the out-of-bounds rows of this store,
    # and the mean over the exact N rows happens outside the kernel.
    loss_ref[...] = loss


def _vmem_capacity_bytes() -> int:
    try:
        return int(pltpu.get_tpu_info().vmem_capacity_bytes)
    except Exception:
        return 64 * 1024 * 1024          # conservative (v7x-sized) fallback


def _sublane_pack(dtype) -> int:
    """Rows per sublane pack: 8 for f32, 16 for bf16, 32 for int8/fp8."""
    itemsize = max(1, jnp.dtype(dtype).itemsize)
    return 8 * max(1, 4 // itemsize)


def _pick_tile_n(n_rows: int, n_cols: int, in_dtype) -> int:
    """Largest sublane-pack-aligned row tile whose working set fits VMEM."""
    pack = _sublane_pack(in_dtype)
    if n_rows <= pack:
        return n_rows

    itemsize = jnp.dtype(in_dtype).itemsize
    # ~60% of physical VMEM as working-set budget (rest is headroom for
    # Mosaic internal scratch and the raised vmem_limit below).
    budget = int(_vmem_capacity_bytes() * 0.60)

    per_row = (
        2 * (n_cols * itemsize + 128 * 4)   # dbl-buffered logits + lane-padded labels
        + 4 * n_cols * 4                    # full-width f32 temps (x-m, e, iota, masked e)
        + 8 * 128 * 4                       # lane-padded (TILE_N,1) temps + dbl-buffered out
    )
    tile = budget // max(per_row, 1)
    tile = min(tile, n_rows)
    tile = (tile // pack) * pack
    return max(tile, pack)


def phuber_cross_entropy(logits: jax.Array,
                         target: jax.Array,
                         tau: float = 10.0,
                         *,
                         tile_n: int | None = None) -> jax.Array:
    """Scalar f32 PHuber cross-entropy. logits: (N, C) float, target: (N,) int."""
    n_rows, n_cols = logits.shape
    t = target.astype(jnp.int32).reshape(n_rows, 1)

    if tile_n is None:
        tile_n = _pick_tile_n(n_rows, n_cols, logits.dtype)
    n_blocks = pl.cdiv(n_rows, tile_n)

    vmem_cap = _vmem_capacity_bytes()
    vmem_limit = max(32 << 20, min(int(vmem_cap * 0.85), vmem_cap - (8 << 20)))

    kernel = functools.partial(_phuber_kernel, tau=float(tau))

    per_row_loss = pl.pallas_call(
        kernel,
        out_shape=jax.ShapeDtypeStruct((n_rows, 1), jnp.float32),
        grid_spec=pltpu.PrefetchScalarGridSpec(
            num_scalar_prefetch=0,
            grid=(n_blocks,),
            in_specs=[
                pl.BlockSpec((tile_n, n_cols), lambda i: (i, 0)),  # logits block
                pl.BlockSpec((tile_n, 1), lambda i: (i, 0)),       # labels block
            ],
            out_specs=pl.BlockSpec((tile_n, 1), lambda i: (i, 0)),  # per-row losses
        ),
        compiler_params=pltpu.CompilerParams(
            dimension_semantics=("parallel",),   # independent blocks -> megacore-shardable
            vmem_limit_bytes=int(vmem_limit),
        ),
    )(logits, t)

    # Tiny final reduction + divide-by-N in plain JAX (exact N, f32).
    return jnp.mean(per_row_loss)


def _reference(logits, target, tau=10.0):
    p = jax.nn.softmax(logits.astype(jnp.float32), axis=1)
    p_t = p[jnp.arange(logits.shape[0]), target]
    clip = p_t <= 1.0 / tau
    loss = jnp.where(clip, -tau * p_t + math.log(tau) + 1.0, -jnp.log(p_t))
    return jnp.mean(loss)


if __name__ == "__main__":
    key = jax.random.PRNGKey(0)
    k1, k2, k3 = jax.random.split(key, 3)

    # Small shapes consistent with the module: (minibatch, C) logits, (minibatch,) labels.
    N, C = 8, 32
    logits = jax.random.normal(k1, (N, C), dtype=jnp.float32)
    target = jax.random.randint(k2, (N,), 0, C, dtype=jnp.int32)
    # Boost the target logit on half the rows so both PHuber branches are hit.
    boost = jnp.where(jnp.arange(N) % 2 == 0, 6.0, 0.0)
    logits = logits.at[jnp.arange(N), target].add(boost)

    loss = jax.block_until_ready(phuber_cross_entropy(logits, target, tau=10.0))
    ref = _reference(logits, target, tau=10.0)
    assert jnp.allclose(loss, ref, rtol=1e-5, atol=1e-5), (loss, ref)

    # Ragged batch (N not a multiple of the row tile) to exercise the
    # multi-block grid + clipped last output block path.
    N2 = 12
    logits2 = jax.random.normal(k3, (N2, C), dtype=jnp.float32)
    target2 = jax.random.randint(k2, (N2,), 0, C, dtype=jnp.int32)
    loss2 = jax.block_until_ready(
        phuber_cross_entropy(logits2, target2, tau=10.0, tile_n=8))
    ref2 = _reference(logits2, target2, tau=10.0)
    assert jnp.allclose(loss2, ref2, rtol=1e-5, atol=1e-5), (loss2, ref2)

    print("KERNEL_OK")
</pallas_src>

<mosaic_0001>
module attributes {stable_mosaic.version = 11 : i64} {
  func.func @_phuber_kernel(%arg0: i32, %arg1: memref<8x32xf32, #tpu.memory_space<vmem>>, %arg2: memref<8x1xi32, #tpu.memory_space<vmem>>, %arg3: memref<8x1xf32, #tpu.memory_space<vmem>>) attributes {dimension_semantics = [#tpu.dimension_semantics<parallel>], iteration_bounds = array<i64: 1>, scalar_prefetch = 0 : i64, scratch_operands = 0 : i64, tpu.core_type = #tpu.core_type<tc>, window_params = [{transform_indices = @transform_0, window_bounds = array<i64: 8, 32>}, {transform_indices = @transform_1, window_bounds = array<i64: 8, 1>}, {transform_indices = @transform_2, window_bounds = array<i64: 8, 1>}]} {
    %c0 = arith.constant 0 : index
    %c0_0 = arith.constant 0 : index
    %0 = vector.load %arg1[%c0, %c0_0] : memref<8x32xf32, #tpu.memory_space<vmem>>, vector<8x32xf32>
    %c0_1 = arith.constant 0 : index
    %c0_2 = arith.constant 0 : index
    %1 = vector.load %arg2[%c0_1, %c0_2] : memref<8x1xi32, #tpu.memory_space<vmem>>, vector<8x1xi32>
    %cst = arith.constant dense<0xFF800000> : vector<8xf32>
    %2 = vector.multi_reduction <maximumf>, %0, %cst [1] : vector<8x32xf32> to vector<8xf32>
    %3 = vector.shape_cast %2 : vector<8xf32> to vector<8x1xf32>
    %4 = vector.broadcast %3 : vector<8x1xf32> to vector<8x32xf32>
    %5 = arith.subf %0, %4 : vector<8x32xf32>
    %6 = math.exp %5 : vector<8x32xf32>
    %7 = tpu.iota {dimensions = array<i32: 1>} : vector<8x32xi32>
    %cst_3 = arith.constant dense<0.000000e+00> : vector<8xf32>
    %8 = vector.multi_reduction <add>, %6, %cst_3 [1] : vector<8x32xf32> to vector<8xf32>
    %9 = vector.shape_cast %8 : vector<8xf32> to vector<8x1xf32>
    %10 = vector.broadcast %1 : vector<8x1xi32> to vector<8x32xi32>
    %11 = arith.cmpi eq, %7, %10 : vector<8x32xi32>
    %cst_4 = arith.constant 0.000000e+00 : f32
    %12 = vector.broadcast %cst_4 : f32 to vector<8x32xf32>
    %13 = arith.select %11, %6, %12 : vector<8x32xi1>, vector<8x32xf32>
    %cst_5 = arith.constant dense<0.000000e+00> : vector<8xf32>
    %14 = vector.multi_reduction <add>, %13, %cst_5 [1] : vector<8x32xf32> to vector<8xf32>
    %15 = vector.shape_cast %14 : vector<8xf32> to vector<8x1xf32>
    %16 = arith.divf %15, %9 : vector<8x1xf32>
    %17 = math.log %15 : vector<8x1xf32>
    %18 = math.log %9 : vector<8x1xf32>
    %19 = arith.subf %17, %18 : vector<8x1xf32>
    %cst_6 = arith.constant 1.000000e-01 : f32
    %20 = vector.broadcast %cst_6 : f32 to vector<8x1xf32>
    %21 = arith.cmpf ole, %16, %20 : vector<8x1xf32>
    %cst_7 = arith.constant -1.000000e+01 : f32
    %22 = vector.broadcast %cst_7 : f32 to vector<8x1xf32>
    %23 = arith.mulf %22, %16 : vector<8x1xf32>
    %cst_8 = arith.constant 3.30258512 : f32
    %24 = vector.broadcast %cst_8 : f32 to vector<8x1xf32>
    %25 = arith.addf %23, %24 : vector<8x1xf32>
    %cst_9 = arith.constant 0.000000e+00 : f32
    %26 = vector.broadcast %cst_9 : f32 to vector<8x1xf32>
    %27 = arith.subf %26, %19 : vector<8x1xf32>
    %28 = arith.select %21, %25, %27 : vector<8x1xi1>, vector<8x1xf32>
    %c0_10 = arith.constant 0 : index
    %c0_11 = arith.constant 0 : index
    %29 = vector.load %arg3[%c0_10, %c0_11] : memref<8x1xf32, #tpu.memory_space<vmem>>, vector<8x1xf32>
    tpu.vector_store %arg3[%c0_10, %c0_11], %28 {strides = array<i32>} : memref<8x1xf32, #tpu.memory_space<vmem>>, vector<8x1xf32>,
    return
  }
  func.func @transform_0(%arg0: i32) -> (i32, i32) {
    %c0_i32 = arith.constant 0 : i32
    %c0_i32_0 = arith.constant 0 : i32
    return %arg0, %c0_i32 : i32, i32
  }
  func.func @transform_1(%arg0: i32) -> (i32, i32) {
    %c0_i32 = arith.constant 0 : i32
    %c0_i32_0 = arith.constant 0 : i32
    return %arg0, %c0_i32 : i32, i32
  }
  func.func @transform_2(%arg0: i32) -> (i32, i32) {
    %c0_i32 = arith.constant 0 : i32
    %c0_i32_0 = arith.constant 0 : i32
    return %arg0, %c0_i32 : i32, i32
  }
}

</mosaic_0001>

<bundles_post_ra>
// kernel: tpu_custom_call.1
= control target key start
LH: loop header
LB: loop body
LE: loop exit
PB: predicated region body
PF: predicated region fallthrough
CT: control target
= control target key end

     0   :  { %vm13_vm0 = vcmask 261120   ;;  %v61_v1 = vmov 0   ;;  %v20_v7 = vlaneseq  ;;  %vm45_vm2 = vcmask 7168   ;;  %s89_s0 = inlined_call_operand.vmem [shape: f32[8,32], index: 0, kind: input, shape index: {}]   ;;  %s90_s1 = inlined_call_operand.vmem [shape: s32[8,1], index: 1, kind: input, shape index: {}]   ;;  %s91_s2 = inlined_call_operand.vmem [shape: f32[8,1], index: 2, kind: output, shape index: {}]  }
   0x1   :  { %v11_v0 = vld [vmem:[%s89_s0] sm:$0xff]  ;;  %52 = vset.pattern.permute.xlu0 %v61_v1 }
   0x2   :  { %v14_v2 = vsel %vm13_vm0, %v11_v0, -inf  ;;  %v12_v3 = vld [vmem:[%s90_s1] sm:$0xff]  ;;  %v21_v8 = vand.u32 127, %v20_v7 }
   0x3   :  { %15 = vmax.xlane.f32.xlu0 %v14_v2 }
  0x19   :  { %26 = vperm.xlu0 %52, %v12_v3  }
  0x90   :  { %v16_v4 = vpop.xlane.xlu0 %15 }
  0x91   :  { %v17_v5 = vsub.f32 %v11_v0, %v16_v4 }
  0x93   :  { %v18_v6 = vmul.f32 1.442695, %v17_v5 }
  0x95   :  { %53 = vpow2.f32 %v18_v6 }
  0x98   :  { %v27_v9 = vpop.permute.xlu0 %26 }
  0x99   :  { %vm28_vm1 = vcmp.eq.s32.totalorder %v21_v8, %v27_v9 }
  0x9f   :  { %v54_v10 = vpop.eup %53 }
  0xa0   :  { %v22_v11 = vsel %vm13_vm0, %v54_v10, 0.0  ;;  %v29_v12 = vsel %vm28_vm1, %v54_v10, 0.0 }
  0xa1   :  { %23 = vadd.xlane.f32.xlu1 %v22_v11  ;;  %v30_v13 = vsel %vm13_vm0, %v29_v12, 0.0 }
  0xa5   :  { %31 = vadd.xlane.f32.xlu1 %v30_v13 }
 0x12e   :  { %v24_v14 = vpop.xlane.xlu1 %23 }
 0x12f   :  { %55 = vrcp.f32 %v24_v14 }
 0x130   :  { %57 = vlog2.f32 %v24_v14 }
 0x132   :  { %v32_v15 = vpop.xlane.xlu1 %31 }
 0x133   :  { %59 = vlog2.f32 %v32_v15 }
 0x139   :  { %v56_v16 = vpop.eup %55 }
 0x13a   :  { %v34_v17 = vmul.f32 %v56_v16, %v32_v15  ;;  %v58_v18 = vpop.eup %57 }
 0x13b   :  { %v38_v20 = vmul.f32 0.6931472, %v58_v18 }
 0x13c   :  { %v41_v22 = vmul.f32 -10.0, %v34_v17  ;;  %vm40_vm3 = vcmp.le.f32.partialorder %v34_v17, 0.1 }
 0x13d   :  { %v60_v19 = vpop.eup %59 }
 0x13e   :  { %v36_v21 = vmul.f32 0.6931472, %v60_v19  ;;  %v42_v24 = vadd.f32 3.3025851, %v41_v22 }
 0x140   :  { %v39_v23 = vsub.f32 %v36_v21, %v38_v20 }
 0x142   :  { %v43_v25 = vsub.f32 0.0, %v39_v23 }
 0x144   :  { %v44_v26 = vsel %vm40_vm3, %v42_v24, %v43_v25 }
 0x145   :  { %46 = vst.msk [vmem:[%s91_s2] sm:$0xff] %vm45_vm2, %v44_v26 }

</bundles_post_ra>
